<compile_context>
chip_gen: v6e
topology: v6e:2x2x1
jax: 0.10.0
libtpu: 0.0.40
codegen_flags: <defaults>
</compile_context>

<pallas_src>
import functools

import jax
import jax.numpy as jnp
from jax.experimental import pallas as pl
from jax.experimental.pallas import tpu as pltpu


STATE_SIZE = 3
ACTION_SIZE = 3
HIDDEN = 64

_LANE = 128       # lane tile (last dim)
_SUBLANE = 8      # sublane tile (second-to-last dim, f32)
_MAX_TB = 2048    # max batch-lanes per grid step


def _round_up(n: int, m: int) -> int:
    return ((n + m - 1) // m) * m


def _cdiv(a: int, b: int) -> int:
    return -(-a // b)


def _qnet_kernel(x_ref, w1_ref, b1_ref, w2_ref, b2_ref, w3_ref, b3_ref, out_ref):
    """Fused MLP, batch on lanes: out = W3 @ relu(W2 @ relu(W1 @ x + b1) + b2) + b3."""
    x = x_ref[...]                                                          # (Sp, TB)
    h1 = jnp.dot(w1_ref[...], x, preferred_element_type=jnp.float32) + b1_ref[...]
    h1 = jnp.maximum(h1, 0.0)                                               # (H, TB)
    h2 = jnp.dot(w2_ref[...], h1, preferred_element_type=jnp.float32) + b2_ref[...]
    h2 = jnp.maximum(h2, 0.0)                                               # (H, TB)
    out = jnp.dot(w3_ref[...], h2, preferred_element_type=jnp.float32) + b3_ref[...]
    out_ref[...] = out.astype(out_ref.dtype)                                # (Ap, TB)


def init_qnetwork_params(key, state_size: int, action_size: int):
    """Deterministic PyTorch-style init (weights stored as (out, in), like nn.Linear)."""
    dims = [(state_size, HIDDEN), (HIDDEN, HIDDEN), (HIDDEN, action_size)]
    params = {}
    for i, (fan_in, fan_out) in enumerate(dims, start=1):
        key, kw, kb = jax.random.split(key, 3)
        bound = 1.0 / jnp.sqrt(jnp.float32(fan_in))
        params[f"w{i}"] = jax.random.uniform(kw, (fan_out, fan_in), jnp.float32, -bound, bound)
        params[f"b{i}"] = jax.random.uniform(kb, (fan_out,), jnp.float32, -bound, bound)
    return params


def prepare_padded_params(params):
    """One-time (off the per-call path): keep (out, in) orientation, sublane-pad features."""
    Sp = _round_up(STATE_SIZE, _SUBLANE)    # 3 -> 8
    Ap = _round_up(ACTION_SIZE, _SUBLANE)   # 3 -> 8

    def pad2(a, rows, cols):
        a = jnp.asarray(a, jnp.float32)
        return jnp.pad(a, ((0, rows - a.shape[0]), (0, cols - a.shape[1])))

    return {
        "w1": pad2(params["w1"], HIDDEN, Sp),           # (64, 8)
        "b1": pad2(params["b1"][:, None], HIDDEN, 1),   # (64, 1)
        "w2": pad2(params["w2"], HIDDEN, HIDDEN),       # (64, 64)
        "b2": pad2(params["b2"][:, None], HIDDEN, 1),   # (64, 1)
        "w3": pad2(params["w3"], Ap, HIDDEN),           # (8, 64)
        "b3": pad2(params["b3"][:, None], Ap, 1),       # (8, 1)
    }


def _batch_tiling(batch: int):
    """Pick (TB, Bp): batch-lane tile (multiple of 128) and padded batch extent."""
    b128 = _round_up(batch, _LANE)
    # Enough steps to stay under _MAX_TB, and >= 2 balanced steps whenever the
    # batch spans more than one 128-lane tile (2-TensorCore sharding on v7x).
    n_steps = max(_cdiv(b128, _MAX_TB), 2 if b128 > _LANE else 1)
    tb = _round_up(_cdiv(b128, n_steps), _LANE)
    bp = _round_up(b128, tb)
    return tb, bp


@functools.partial(jax.jit, static_argnames=("action_size",))
def qnetwork_forward(state, padded_params, action_size: int = ACTION_SIZE):
    """state: (B, state_size) -> (B, action_size), using pre-padded params."""
    B, S = state.shape
    Sp = padded_params["w1"].shape[1]
    H = padded_params["w2"].shape[0]
    Ap = padded_params["w3"].shape[0]

    TB, Bp = _batch_tiling(B)
    grid = (Bp // TB,)

    # Only per-call wrapper op: transpose to feature-major and pad the tiny
    # feature dim to the sublane tile + the batch to the lane tile.
    x_t = jnp.pad(state.astype(jnp.float32).T, ((0, Sp - S), (0, Bp - B)))

    flops = 2 * Bp * (Sp * H + H * H + H * Ap)
    bytes_accessed = 4 * (
        Bp * Sp + Bp * Ap              # activations in / out
        + H * Sp + H * H + Ap * H      # resident weights
        + 2 * H + Ap                   # biases
    )

    resident = lambda i: (0, 0)  # weights / biases stay in VMEM across the grid
    out_t = pl.pallas_call(
        _qnet_kernel,
        out_shape=jax.ShapeDtypeStruct((Ap, Bp), jnp.float32),
        grid=grid,
        in_specs=[
            pl.BlockSpec((Sp, TB), lambda i: (0, i)),   # x: batch-on-lanes tiles
            pl.BlockSpec((H, Sp), resident),            # W1 (out, in)
            pl.BlockSpec((H, 1), resident),             # b1
            pl.BlockSpec((H, H), resident),             # W2
            pl.BlockSpec((H, 1), resident),             # b2
            pl.BlockSpec((Ap, H), resident),            # W3
            pl.BlockSpec((Ap, 1), resident),            # b3
        ],
        out_specs=pl.BlockSpec((Ap, TB), lambda i: (0, i)),
        compiler_params=pltpu.CompilerParams(
            dimension_semantics=("parallel",),          # 2-TC sharding on v7x
        ),
        cost_estimate=pl.CostEstimate(
            flops=flops, transcendentals=0, bytes_accessed=bytes_accessed),
    )(
        x_t,
        padded_params["w1"], padded_params["b1"],
        padded_params["w2"], padded_params["b2"],
        padded_params["w3"], padded_params["b3"],
    )

    return out_t[:action_size, :B].T


def _reference_forward(state, params):
    x = jnp.maximum(state @ params["w1"].T + params["b1"], 0.0)
    x = jnp.maximum(x @ params["w2"].T + params["b2"], 0.0)
    return x @ params["w3"].T + params["b3"]


if __name__ == "__main__":
    key = jax.random.PRNGKey(0)
    kp, kx = jax.random.split(key)

    params = init_qnetwork_params(kp, STATE_SIZE, ACTION_SIZE)
    padded_params = prepare_padded_params(params)   # hoisted out of the call path

    batch = 2
    state = jax.random.normal(kx, (batch, STATE_SIZE), jnp.float32)

    out = qnetwork_forward(state, padded_params)
    out = jax.block_until_ready(out)

    ref = _reference_forward(state, params)
    assert out.shape == (batch, ACTION_SIZE)
    assert jnp.allclose(out, ref, atol=1e-4, rtol=1e-4)

    # Also exercise a batch large enough to span multiple balanced grid steps.
    big_batch = 1024 + 37
    big_state = jax.random.normal(jax.random.PRNGKey(1), (big_batch, STATE_SIZE), jnp.float32)
    big_out = jax.block_until_ready(qnetwork_forward(big_state, padded_params))
    big_ref = _reference_forward(big_state, params)
    assert big_out.shape == (big_batch, ACTION_SIZE)
    assert jnp.allclose(big_out, big_ref, atol=1e-4, rtol=1e-4)

    print("KERNEL_OK")
</pallas_src>

<mosaic_0001>
module attributes {stable_mosaic.version = 11 : i64} {
  func.func @_qnet_kernel(%arg0: i32, %arg1: memref<8x128xf32, #tpu.memory_space<vmem>>, %arg2: memref<64x8xf32, #tpu.memory_space<vmem>>, %arg3: memref<64x1xf32, #tpu.memory_space<vmem>>, %arg4: memref<64x64xf32, #tpu.memory_space<vmem>>, %arg5: memref<64x1xf32, #tpu.memory_space<vmem>>, %arg6: memref<8x64xf32, #tpu.memory_space<vmem>>, %arg7: memref<8x1xf32, #tpu.memory_space<vmem>>, %arg8: memref<8x128xf32, #tpu.memory_space<vmem>>) attributes {dimension_semantics = [#tpu.dimension_semantics<parallel>], iteration_bounds = array<i64: 1>, scalar_prefetch = 0 : i64, scratch_operands = 0 : i64, tpu.core_type = #tpu.core_type<tc>, window_params = [{transform_indices = @transform_0, window_bounds = array<i64: 8, 128>}, {pipeline_mode = #tpu.pipeline_mode<synchronous>, transform_indices = @transform_1, window_bounds = array<i64: 64, 8>}, {pipeline_mode = #tpu.pipeline_mode<synchronous>, transform_indices = @transform_2, window_bounds = array<i64: 64, 1>}, {pipeline_mode = #tpu.pipeline_mode<synchronous>, transform_indices = @transform_3, window_bounds = array<i64: 64, 64>}, {pipeline_mode = #tpu.pipeline_mode<synchronous>, transform_indices = @transform_4, window_bounds = array<i64: 64, 1>}, {pipeline_mode = #tpu.pipeline_mode<synchronous>, transform_indices = @transform_5, window_bounds = array<i64: 8, 64>}, {pipeline_mode = #tpu.pipeline_mode<synchronous>, transform_indices = @transform_6, window_bounds = array<i64: 8, 1>}, {transform_indices = @transform_7, window_bounds = array<i64: 8, 128>}]} {
    %c0 = arith.constant 0 : index
    %c0_0 = arith.constant 0 : index
    %0 = vector.load %arg1[%c0, %c0_0] : memref<8x128xf32, #tpu.memory_space<vmem>>, vector<8x128xf32>
    %c0_1 = arith.constant 0 : index
    %c0_2 = arith.constant 0 : index
    %1 = vector.load %arg2[%c0_1, %c0_2] : memref<64x8xf32, #tpu.memory_space<vmem>>, vector<64x8xf32>
    %cst = arith.constant dense<0.000000e+00> : vector<64x128xf32>
    %2 = tpu.matmul %1, %0, %cst {dimension_numbers = #tpu.dot_dimension_numbers<[1], [0], [0], [1], [0, 0, 1, 1], [], []>} : vector<64x8xf32>, vector<8x128xf32>, vector<64x128xf32> -> vector<64x128xf32>
    %c0_3 = arith.constant 0 : index
    %c0_4 = arith.constant 0 : index
    %3 = vector.load %arg3[%c0_3, %c0_4] : memref<64x1xf32, #tpu.memory_space<vmem>>, vector<64x1xf32>
    %4 = vector.broadcast %3 : vector<64x1xf32> to vector<64x128xf32>
    %5 = arith.addf %2, %4 : vector<64x128xf32>
    %cst_5 = arith.constant 0.000000e+00 : f32
    %6 = vector.broadcast %cst_5 : f32 to vector<64x128xf32>
    %7 = arith.maximumf %5, %6 : vector<64x128xf32>
    %c0_6 = arith.constant 0 : index
    %c0_7 = arith.constant 0 : index
    %8 = vector.load %arg4[%c0_6, %c0_7] : memref<64x64xf32, #tpu.memory_space<vmem>>, vector<64x64xf32>
    %cst_8 = arith.constant dense<0.000000e+00> : vector<64x128xf32>
    %9 = tpu.matmul %8, %7, %cst_8 {dimension_numbers = #tpu.dot_dimension_numbers<[1], [0], [0], [1], [0, 0, 1, 1], [], []>} : vector<64x64xf32>, vector<64x128xf32>, vector<64x128xf32> -> vector<64x128xf32>
    %c0_9 = arith.constant 0 : index
    %c0_10 = arith.constant 0 : index
    %10 = vector.load %arg5[%c0_9, %c0_10] : memref<64x1xf32, #tpu.memory_space<vmem>>, vector<64x1xf32>
    %11 = vector.broadcast %10 : vector<64x1xf32> to vector<64x128xf32>
    %12 = arith.addf %9, %11 : vector<64x128xf32>
    %cst_11 = arith.constant 0.000000e+00 : f32
    %13 = vector.broadcast %cst_11 : f32 to vector<64x128xf32>
    %14 = arith.maximumf %12, %13 : vector<64x128xf32>
    %c0_12 = arith.constant 0 : index
    %c0_13 = arith.constant 0 : index
    %15 = vector.load %arg6[%c0_12, %c0_13] : memref<8x64xf32, #tpu.memory_space<vmem>>, vector<8x64xf32>
    %cst_14 = arith.constant dense<0.000000e+00> : vector<8x128xf32>
    %16 = tpu.matmul %15, %14, %cst_14 {dimension_numbers = #tpu.dot_dimension_numbers<[1], [0], [0], [1], [0, 0, 1, 1], [], []>} : vector<8x64xf32>, vector<64x128xf32>, vector<8x128xf32> -> vector<8x128xf32>
    %c0_15 = arith.constant 0 : index
    %c0_16 = arith.constant 0 : index
    %17 = vector.load %arg7[%c0_15, %c0_16] : memref<8x1xf32, #tpu.memory_space<vmem>>, vector<8x1xf32>
    %18 = vector.broadcast %17 : vector<8x1xf32> to vector<8x128xf32>
    %19 = arith.addf %16, %18 : vector<8x128xf32>
    %c0_17 = arith.constant 0 : index
    %c0_18 = arith.constant 0 : index
    %20 = vector.load %arg8[%c0_17, %c0_18] : memref<8x128xf32, #tpu.memory_space<vmem>>, vector<8x128xf32>
    tpu.vector_store %arg8[%c0_17, %c0_18], %19 {strides = array<i32>} : memref<8x128xf32, #tpu.memory_space<vmem>>, vector<8x128xf32>,
    return
  }
  func.func @transform_0(%arg0: i32) -> (i32, i32) {
    %c0_i32 = arith.constant 0 : i32
    %c0_i32_0 = arith.constant 0 : i32
    return %c0_i32, %arg0 : i32, i32
  }
  func.func @transform_1(%arg0: i32) -> (i32, i32) {
    %c0_i32 = arith.constant 0 : i32
    %c0_i32_0 = arith.constant 0 : i32
    %c0_i32_1 = arith.constant 0 : i32
    return %c0_i32, %c0_i32_0 : i32, i32
  }
  func.func @transform_2(%arg0: i32) -> (i32, i32) {
    %c0_i32 = arith.constant 0 : i32
    %c0_i32_0 = arith.constant 0 : i32
    %c0_i32_1 = arith.constant 0 : i32
    return %c0_i32, %c0_i32_0 : i32, i32
  }
  func.func @transform_3(%arg0: i32) -> (i32, i32) {
    %c0_i32 = arith.constant 0 : i32
    %c0_i32_0 = arith.constant 0 : i32
    %c0_i32_1 = arith.constant 0 : i32
    return %c0_i32, %c0_i32_0 : i32, i32
  }
  func.func @transform_4(%arg0: i32) -> (i32, i32) {
    %c0_i32 = arith.constant 0 : i32
    %c0_i32_0 = arith.constant 0 : i32
    %c0_i32_1 = arith.constant 0 : i32
    return %c0_i32, %c0_i32_0 : i32, i32
  }
  func.func @transform_5(%arg0: i32) -> (i32, i32) {
    %c0_i32 = arith.constant 0 : i32
    %c0_i32_0 = arith.constant 0 : i32
    %c0_i32_1 = arith.constant 0 : i32
    return %c0_i32, %c0_i32_0 : i32, i32
  }
  func.func @transform_6(%arg0: i32) -> (i32, i32) {
    %c0_i32 = arith.constant 0 : i32
    %c0_i32_0 = arith.constant 0 : i32
    %c0_i32_1 = arith.constant 0 : i32
    return %c0_i32, %c0_i32_0 : i32, i32
  }
  func.func @transform_7(%arg0: i32) -> (i32, i32) {
    %c0_i32 = arith.constant 0 : i32
    %c0_i32_0 = arith.constant 0 : i32
    return %c0_i32, %arg0 : i32, i32
  }
}

</mosaic_0001>

<bundles_post_ra>
// kernel: qnetwork_forward.1
= control target key start
LH: loop header
LB: loop body
LE: loop exit
PB: predicated region body
PF: predicated region fallthrough
CT: control target
= control target key end

     0   :  { %vm83_vm0 = vcmask 64512   ;;  %v617_v3 = vmov 0   ;;  %vm277_vm1 = vcmask 523264   ;;  %vm619_vm2 = vmmov 0   ;;  %s785_s0 = inlined_call_operand.vmem [shape: f32[8,128], index: 0, kind: input, shape index: {}]   ;;  %s786_s1 = inlined_call_operand.vmem [shape: f32[64,8], index: 1, kind: input, shape index: {}]   ;;  %s787_s2 = inlined_call_operand.vmem [shape: f32[64,1], index: 2, kind: input, shape index: {}]   ;;  %s788_s4 = inlined_call_operand.vmem [shape: f32[64,1], index: 4, kind: input, shape index: {}]   ;;  %s789_s6 = inlined_call_operand.vmem [shape: f32[8,1], index: 6, kind: input, shape index: {}]   ;;  %s790_s3 = inlined_call_operand.vmem [shape: f32[64,64], index: 3, kind: input, shape index: {}]   ;;  %s791_s5 = inlined_call_operand.vmem [shape: f32[8,64], index: 5, kind: input, shape index: {}]   ;;  %s792_s7 = inlined_call_operand.vmem [shape: f32[8,128], index: 7, kind: output, shape index: {}]  }
   0x1   :  { %v26_v0 = vld [vmem:[%s785_s0] sm:$0xff]  ;;  %v28_v2 = vld [vmem:[%s786_s1 + $0x8] sm:$0xff]  ;;  %615 = vset.pattern.permute.xlu0 %v617_v3  ;;  %616 = vset.pattern.permute.xlu1 %v617_v3  ;;  %v29_v4 = vld [vmem:[%s786_s1 + $0x10] sm:$0xff]  ;;  %v618_v3 = vmov 0.0  }
   0x2   :  { %v27_v1 = vld [vmem:[%s786_s1] sm:$0xff]  ;;  %551 = vmatprep.subr.mxu0 %v26_v0  ;;  %v42_v5 = vld [vmem:[%s787_s2 + $0x38] sm:$0xff]  ;;  %v40_v6 = vld [vmem:[%s787_s2 + $0x28] sm:$0xff] }
   0x3   :  { %553 = vmatprep.mubr.msk.f32.mxu0 %vm83_vm0, %v27_v1  ;;  %552 = vmatpush3.msra.mxu0 %v26_v0  ;;  %v30_v7 = vld [vmem:[%s786_s1 + $0x18] sm:$0xff]  ;;  %v31_v8 = vld [vmem:[%s786_s1 + $0x20] sm:$0xff]  ;;  %v41_v9 = vld [vmem:[%s787_s2 + $0x30] sm:$0xff] }
   0x4   :  { %554 = vmatmul.mubr.msk.f32.vlgmr.msra.gmra.mxu0 %vm83_vm0, %v28_v2  ;;  %80 = vperm.xlu0 %615, %v42_v5   ;;  %v39_v10 = vld [vmem:[%s787_s2 + $0x20] sm:$0xff]  ;;  %v32_v11 = vld [vmem:[%s786_s1 + $0x28] sm:$0xff]  ;;  %v33_v12 = vld [vmem:[%s786_s1 + $0x30] sm:$0xff] }
   0x5   :  { %556 = vmatprep.mubr.msk.f32.mxu0 %vm83_vm0, %v29_v4  ;;  %70 = vperm.xlu1 %616, %v40_v6   ;;  %v38_v13 = vld [vmem:[%s787_s2 + $0x18] sm:$0xff]  ;;  %v37_v14 = vld [vmem:[%s787_s2 + $0x10] sm:$0xff]  ;;  %v36_v16 = vld [vmem:[%s787_s2 + $0x8] sm:$0xff] }
   0x6   :  { %v34_v15 = vld [vmem:[%s786_s1 + $0x38] sm:$0xff]  ;;  %v35_v17 = vld [vmem:[%s787_s2] sm:$0xff]  ;;  %v235_v19 = vld [vmem:[%s788_s4 + $0x30] sm:$0xff]  ;;  %593 = vmatprep.subr.mxu0 %v618_v3 }
   0x7   :  { %v236_v18 = vld [vmem:[%s788_s4 + $0x38] sm:$0xff]  ;;  %v234_v20 = vld [vmem:[%s788_s4 + $0x28] sm:$0xff]  ;;  %v233_v21 = vld [vmem:[%s788_s4 + $0x20] sm:$0xff] }
   0x8   :  { %557 = vmatmul.mubr.msk.f32.gmra.mxu0 %vm83_vm0, %v30_v7  ;;  %75 = vperm.xlu0 %615, %v41_v9   ;;  %v232_v22 = vld [vmem:[%s788_s4 + $0x18] sm:$0xff]  ;;  %v231_v23 = vld [vmem:[%s788_s4 + $0x10] sm:$0xff]  ;;  %v230_v24 = vld [vmem:[%s788_s4 + $0x8] sm:$0xff] }
   0x9   :  { %559 = vmatprep.mubr.msk.f32.mxu0 %vm83_vm0, %v31_v8  ;;  %65 = vperm.xlu1 %616, %v39_v10   ;;  %v229_v25 = vld [vmem:[%s788_s4] sm:$0xff]  ;;  %v222_v60 = vld [vmem:[%s790_s3 + $0x8] sm:$0xff]  ;;  %v223_v61 = vld [vmem:[%s790_s3 + $0x10] sm:$0xff] }
   0xa   :  { %v416_v26 = vld [vmem:[%s789_s6] sm:$0xff]  ;;  %v224_v62 = vld [vmem:[%s790_s3 + $0x18] sm:$0xff]  ;;  %v226_v0 = vld [vmem:[%s790_s3 + $0x28] sm:$0xff] }
   0xb   :  { %v221_v27 = vld [vmem:[%s790_s3] sm:$0xff]  ;;  %v227_v1 = vld [vmem:[%s790_s3 + $0x30] sm:$0xff]  ;;  %v228_v2 = vld [vmem:[%s790_s3 + $0x38] sm:$0xff] }
   0xc   :  { %560 = vmatmul.mubr.msk.f32.gmra.mxu0 %vm83_vm0, %v32_v11  ;;  %60 = vperm.xlu0 %615, %v38_v13   ;;  %v225_v63 = vld [vmem:[%s790_s3 + $0x20] sm:$0xff] }
   0xd   :  { %562 = vmatprep.mubr.msk.f32.mxu0 %vm83_vm0, %v33_v12  ;;  %55 = vperm.xlu1 %616, %v37_v14  }
   0xe   :  { %581 = vmatprep.mubr.msk.f32.mxu1 %vm277_vm1, %v221_v27 }
  0x10   :  { %563 = vmatmul.mubr.msk.f32.gmra.mxu0 %vm83_vm0, %v34_v15  ;;  %50 = vperm.xlu0 %615, %v36_v16  }
  0x11   :  { %45 = vperm.xlu1 %616, %v35_v17   ;;  %609 = vmatprep.mubr.msk.f32.mxu0 %vm619_vm2, %v618_v3 }
  0x14   :  { %274 = vperm.xlu0 %615, %v236_v18  }
  0x15   :  { %269 = vperm.xlu1 %616, %v235_v19  }
  0x18   :  { %264 = vperm.xlu0 %615, %v234_v20  }
  0x19   :  { %259 = vperm.xlu1 %616, %v233_v21  }
  0x1c   :  { %254 = vperm.xlu0 %615, %v232_v22  }
  0x1d   :  { %249 = vperm.xlu1 %616, %v231_v23  }
  0x20   :  { %244 = vperm.xlu0 %615, %v230_v24  }
  0x21   :  { %239 = vperm.xlu1 %616, %v229_v25  }
  0x24   :  { %419 = vperm.xlu0 %615, %v416_v26  }
  0x7f   :  { %v81_v30 = vpop.permute.xlu0 %80 }
  0x80   :  { %v71_v32 = vpop.permute.xlu1 %70 }
  0x83   :  { %v76_v35 = vpop.permute.xlu0 %75 }
  0x84   :  { %v66_v37 = vpop.permute.xlu1 %65 }
  0x87   :  { %v61_v44 = vpop.permute.xlu0 %60 }
  0x88   :  { %v56_v47 = vpop.permute.xlu1 %55 }
  0x8b   :  { %v51_v52 = vpop.permute.xlu0 %50 }
  0x8c   :  { %v46_v55 = vpop.permute.xlu1 %45 }
  0x8f   :  { %v275_v6 = vpop.permute.xlu0 %274 }
  0x90   :  { %v270_v8 = vpop.permute.xlu1 %269 }
  0x93   :  { %v265_v11 = vpop.permute.xlu0 %264 }
  0x94   :  { %v260_v13 = vpop.permute.xlu1 %259 }
  0x97   :  { %v255_v20 = vpop.permute.xlu0 %254 }
  0x98   :  { %v250_v23 = vpop.permute.xlu1 %249 }
  0xc4   :  { %v555_v28 = vpop.f32.mrf.mxu0 }
  0xc5   :  { %v180_v53 = vadd.f32 %v555_v28, %v51_v52  ;;  %v245_v28 = vpop.permute.xlu0 %244 }
  0xc6   :  { %v174_v29 = vpop.f32.mrf.mxu0 }
  0xc7   :  { %v175_v56 = vadd.f32 %v174_v29, %v46_v55  ;;  %v214_v58 = vmax.f32 %v180_v53, 0.0 }
  0xc8   :  { %v558_v31 = vpop.f32.mrf.mxu0 }
  0xc9   :  { %v190_v48 = vadd.f32 %v558_v31, %v61_v44  ;;  %v213_v59 = vmax.f32 %v175_v56, 0.0  ;;  %v240_v31 = vpop.permute.xlu1 %239 }
  0xca   :  { %v184_v33 = vpop.f32.mrf.mxu0 }
  0xcb   :  { %v185_v50 = vadd.f32 %v184_v33, %v56_v47  ;;  %v216_v54 = vmax.f32 %v190_v48, 0.0 }
  0xcc   :  { %v561_v34 = vpop.f32.mrf.mxu0 }
  0xcd   :  { %v200_v41 = vadd.f32 %v561_v34, %v71_v32  ;;  %v215_v57 = vmax.f32 %v185_v50, 0.0 }
  0xce   :  { %v194_v36 = vpop.f32.mrf.mxu0 }
  0xcf   :  { %v195_v45 = vadd.f32 %v194_v36, %v66_v37  ;;  %v218_v49 = vmax.f32 %v200_v41, 0.0  ;;  %v415_v36 = vld [vmem:[%s791_s5] sm:$0xff]  ;;  %v420_v37 = vpop.permute.xlu0 %419 }
  0xd0   :  { %v564_v38 = vpop.f32.mrf.mxu0 }
  0xd1   :  { %v210_v39 = vadd.f32 %v564_v38, %v81_v30  ;;  %v217_v51 = vmax.f32 %v195_v45, 0.0 }
  0xd2   :  { %v204_v40 = vpop.f32.mrf.mxu0 }
  0xd3   :  { %v220_v42 = vmax.f32 %v210_v39, 0.0  ;;  %v205_v43 = vadd.f32 %v204_v40, %v76_v35 }
  0xd5   :  { %v219_v46 = vmax.f32 %v205_v43, 0.0  ;;  %565 = vmatprep.subr.mxu1 %v220_v42 }
  0xd6   :  { %566 = vmatpush3.msra.mxu1 %v220_v42 }
  0xd7   :  { %567 = vmatprep.subr.mxu1 %v219_v46 }
  0xd8   :  { %568 = vmatpush3.msra.mxu1 %v219_v46 }
  0xd9   :  { %569 = vmatprep.subr.mxu1 %v218_v49 }
  0xda   :  { %570 = vmatpush3.msra.mxu1 %v218_v49 }
  0xdb   :  { %571 = vmatprep.subr.mxu1 %v217_v51 }
  0xdc   :  { %572 = vmatpush3.msra.mxu1 %v217_v51 }
  0xdd   :  { %573 = vmatprep.subr.mxu1 %v216_v54 }
  0xde   :  { %574 = vmatpush3.msra.mxu1 %v216_v54 }
  0xdf   :  { %575 = vmatprep.subr.mxu1 %v215_v57 }
  0xe0   :  { %576 = vmatpush3.msra.mxu1 %v215_v57 }
  0xe1   :  { %577 = vmatprep.subr.mxu1 %v214_v58 }
  0xe2   :  { %578 = vmatpush3.msra.mxu1 %v214_v58 }
  0xe3   :  { %579 = vmatprep.subr.mxu1 %v213_v59 }
  0xe4   :  { %580 = vmatpush3.msra.mxu1 %v213_v59 }
  0xe5   :  { %582 = vmatmul.mubr.msk.f32.vlgmr.msra.gmra.mxu1 %vm277_vm1, %v222_v60 }
  0xe6   :  { %584 = vmatprep.mubr.msk.f32.mxu1 %vm277_vm1, %v223_v61 }
  0xe9   :  { %585 = vmatmul.mubr.msk.f32.gmra.mxu1 %vm277_vm1, %v224_v62 }
  0xea   :  { %587 = vmatprep.mubr.msk.f32.mxu1 %vm277_vm1, %v225_v63 }
  0xed   :  { %588 = vmatmul.mubr.msk.f32.gmra.mxu1 %vm277_vm1, %v226_v0 }
  0xee   :  { %590 = vmatprep.mubr.msk.f32.mxu1 %vm277_vm1, %v227_v1 }
  0xf1   :  { %591 = vmatmul.mubr.msk.f32.gmra.mxu1 %vm277_vm1, %v228_v2 }
 0x1a5   :  { %v583_v4 = vpop.f32.mrf.mxu1 }
 0x1a6   :  { %v374_v29 = vadd.f32 %v583_v4, %v245_v28 }
 0x1a7   :  { %v368_v5 = vpop.f32.mrf.mxu1 }
 0x1a8   :  { %v369_v32 = vadd.f32 %v368_v5, %v240_v31  ;;  %v408_v34 = vmax.f32 %v374_v29, 0.0 }
 0x1a9   :  { %v586_v7 = vpop.f32.mrf.mxu1 }
 0x1aa   :  { %v384_v24 = vadd.f32 %v586_v7, %v255_v20  ;;  %v407_v35 = vmax.f32 %v369_v32, 0.0 }
 0x1ab   :  { %v378_v9 = vpop.f32.mrf.mxu1 }
 0x1ac   :  { %v379_v26 = vadd.f32 %v378_v9, %v250_v23  ;;  %v410_v30 = vmax.f32 %v384_v24, 0.0 }
 0x1ad   :  { %v589_v10 = vpop.f32.mrf.mxu1 }
 0x1ae   :  { %v394_v17 = vadd.f32 %v589_v10, %v265_v11  ;;  %v409_v33 = vmax.f32 %v379_v26, 0.0 }
 0x1af   :  { %v388_v12 = vpop.f32.mrf.mxu1 }
 0x1b0   :  { %v389_v21 = vadd.f32 %v388_v12, %v260_v13  ;;  %v412_v25 = vmax.f32 %v394_v17, 0.0 }
 0x1b1   :  { %v592_v14 = vpop.f32.mrf.mxu1 }
 0x1b2   :  { %v404_v15 = vadd.f32 %v592_v14, %v275_v6  ;;  %v411_v27 = vmax.f32 %v389_v21, 0.0 }
 0x1b3   :  { %v398_v16 = vpop.f32.mrf.mxu1 }
 0x1b4   :  { %v414_v18 = vmax.f32 %v404_v15, 0.0  ;;  %v399_v19 = vadd.f32 %v398_v16, %v270_v8 }
 0x1b6   :  { %v413_v22 = vmax.f32 %v399_v19, 0.0  ;;  %594 = vmatpush3.msra.mxu0 %v414_v18 }
 0x1b7   :  { %595 = vmatprep.subr.mxu0 %v618_v3 }
 0x1b8   :  { %596 = vmatpush3.msra.mxu0 %v413_v22 }
 0x1b9   :  { %597 = vmatprep.subr.mxu0 %v618_v3 }
 0x1ba   :  { %598 = vmatpush3.msra.mxu0 %v412_v25 }
 0x1bb   :  { %599 = vmatprep.subr.mxu0 %v618_v3 }
 0x1bc   :  { %600 = vmatpush3.msra.mxu0 %v411_v27 }
 0x1bd   :  { %601 = vmatprep.subr.mxu0 %v618_v3 }
 0x1be   :  { %602 = vmatpush3.msra.mxu0 %v410_v30 }
 0x1bf   :  { %603 = vmatprep.subr.mxu0 %v618_v3 }
 0x1c0   :  { %604 = vmatpush3.msra.mxu0 %v409_v33 }
 0x1c1   :  { %605 = vmatprep.subr.mxu0 %v618_v3 }
 0x1c2   :  { %606 = vmatpush3.msra.mxu0 %v408_v34 }
 0x1c3   :  { %607 = vmatprep.subr.mxu0 %v618_v3 }
 0x1c4   :  { %608 = vmatpush3.msra.mxu0 %v407_v35 }
 0x1c5   :  { %610 = vmatmul.mubr.msk.f32.vlgmr.msra.gmra.mxu0 %vm277_vm1, %v415_v36 }
 0x285   :  { %v491_v38 = vpop.f32.mrf.mxu0 }
 0x286   :  { %v492_v39 = vadd.f32 %v491_v38, %v420_v37 }
 0x287   :  { %v611_v40 = vpop.f32.mrf.mxu0 }
 0x288   :  { %495 = vst [vmem:[%s792_s7] sm:$0xff] %v492_v39 }

</bundles_post_ra>
